<compile_context>
chip_gen: v7x
topology: tpu7x:2x2x1
jax: 0.10.0
libtpu: 0.0.40
codegen_flags: <defaults>
</compile_context>

<pallas_src>
import jax
import jax.numpy as jnp
from jax.experimental import pallas as pl
from jax.experimental.pallas import tpu as pltpu

H1 = 256
H2 = 128


def _round_up(n, m):
    return ((n + m - 1) // m) * m


def _bc_mlp_kernel(x_ref, w1_ref, b1_ref, w2_ref, b2_ref, w3_ref, b3_ref,
                   o_ref):
    # Weights/biases are VMEM-resident across the batch grid; only x/out tiles
    # are pipelined.  MXU operands follow the weight dtype (f32 or bf16);
    # accumulation and all VPU/EUP math (bias add, ReLU, tanh) stay f32.
    mxu_dtype = w1_ref.dtype
    x = x_ref[...]
    if x.dtype != mxu_dtype:                       # no-op: wrapper pre-casts
        x = x.astype(mxu_dtype)

    # fc1 + relu
    h1 = jnp.dot(x, w1_ref[...], preferred_element_type=jnp.float32)
    h1 = jnp.maximum(h1 + b1_ref[...], 0.0)                       # (TB, 256)

    # fc2 + relu
    h2 = jnp.dot(h1.astype(mxu_dtype), w2_ref[...],
                 preferred_element_type=jnp.float32)
    h2 = jnp.maximum(h2 + b2_ref[...], 0.0)                       # (TB, 128)

    # fc3 + tanh  (lane-dense, padded output tile)
    y = jnp.dot(h2.astype(mxu_dtype), w3_ref[...],
                preferred_element_type=jnp.float32)
    o_ref[...] = jnp.tanh(y + b3_ref[...]).astype(o_ref.dtype)    # (TB, Dout)


def _choose_batch_tile(B, d_in, d_out_p, x_bytes, out_bytes, w_bytes, gran):
    """Largest batch tile that fits a conservative VMEM budget.

    Budget is 12 MiB: safely under v5e's 16 MiB scoped-VMEM default (the most
    restrictive generation) while leaving headroom for compiler temporaries;
    v6e/v7x only get roomier.  Hard cap 2048 rows.
    """
    budget = 12 * 1024 * 1024
    # Resident weights/biases are still double-buffered by the default pipeline.
    weight_bytes = (2 * (d_in * H1 + H1 * H2 + H2 * d_out_p) * w_bytes
                    + 2 * (H1 + H2 + d_out_p) * 4)
    # Per batch-row cost: double-buffered x and out tiles + f32 intermediates
    # (+ their bf16 copies fed back into the MXU in the bf16 path).
    per_row = (2 * d_in * x_bytes + 2 * d_out_p * out_bytes
               + (H1 + H2) * 4 + (H1 + H2) * w_bytes)
    avail = max(budget - weight_bytes, gran * per_row)
    cap = min(2048, max(gran, (avail // per_row) // gran * gran))
    # Keep >= 2 grid steps once the batch is big enough to matter (megacore on
    # v7x); otherwise a single tile covering the whole batch.
    if B >= 1024:
        want = _round_up(-(-B // 2), gran)
    else:
        want = _round_up(B, gran)
    return max(gran, min(cap, want))


def bc_network_panda(x, params, *, use_bf16_mxu=False, out_dtype=None):
    """Forward pass of BCnetworkPanda.

    x: (B, input_dim) float32
    params: dict with w1 (D_in,256), b1 (1,256), w2 (256,128), b2 (1,128),
            w3 (128,D_out), b3 (1,D_out)
    use_bf16_mxu: cast matmul operands (x and weights) to bf16 in HBM, with
            f32 accumulation.  Valid on all TPU generations (v5e MXU is
            bf16-native); loosens accuracy to ~1e-2.
    out_dtype: dtype of the result (default float32).  bfloat16 halves the
            padded output writeback; tanh outputs are in [-1, 1].
    """
    w1, b1 = params["w1"], params["b1"]
    w2, b2 = params["w2"], params["b2"]
    w3, b3 = params["w3"], params["b3"]

    B, d_in = x.shape
    d_out = w3.shape[1]
    out_dtype = jnp.dtype(out_dtype or jnp.float32)

    # Lane-align only the (small) output feature dim so stores are lane-dense.
    # d_in is left unpadded: x's block covers the full dim (no extra HBM copy).
    d_out_p = _round_up(max(d_out, 128), 128)

    mxu_dtype = jnp.bfloat16 if use_bf16_mxu else jnp.float32
    gran = 16 if mxu_dtype == jnp.bfloat16 else 8   # sublane packing

    TB = _choose_batch_tile(
        B, d_in, d_out_p,
        x_bytes=jnp.dtype(mxu_dtype).itemsize,
        out_bytes=out_dtype.itemsize,
        w_bytes=jnp.dtype(mxu_dtype).itemsize,
        gran=gran)
    grid = (pl.cdiv(B, TB),)   # ragged last tile: reads masked-in, writes masked

    x_in = x.astype(mxu_dtype)                       # no-op in the f32 path
    w1_c = w1.astype(mxu_dtype)
    w2_c = w2.astype(mxu_dtype)
    w3_p = jnp.pad(w3, ((0, 0), (0, d_out_p - d_out))).astype(mxu_dtype)
    b3_p = jnp.pad(b3, ((0, 0), (0, d_out_p - d_out)))

    def resident(shape):
        return pl.BlockSpec(shape, lambda i: (0, 0))

    out = pl.pallas_call(
        _bc_mlp_kernel,
        out_shape=jax.ShapeDtypeStruct((B, d_out_p), out_dtype),
        grid_spec=pltpu.PrefetchScalarGridSpec(
            num_scalar_prefetch=0,
            grid=grid,
            in_specs=[
                pl.BlockSpec((TB, d_in), lambda i: (i, 0)),     # x: pipelined
                resident((d_in, H1)), resident((1, H1)),        # fc1
                resident((H1, H2)), resident((1, H2)),          # fc2
                resident((H2, d_out_p)), resident((1, d_out_p)),  # fc3
            ],
            out_specs=pl.BlockSpec((TB, d_out_p), lambda i: (i, 0)),
        ),
        compiler_params=pltpu.CompilerParams(
            dimension_semantics=("parallel",),      # megacore batch split (v7x)
            vmem_limit_bytes=32 * 1024 * 1024),
    )(x_in, w1_c, b1, w2_c, b2, w3_p, b3_p)

    # Slice the lane padding back off (batch is unpadded).
    return out[:, :d_out]


def init_params(key, input_dim, output_dim):
    """Deterministic init matching PyTorch nn.Linear default:
    U(-1/sqrt(fan_in), 1/sqrt(fan_in)) for both weight and bias."""
    ks = jax.random.split(key, 6)

    def linear(kw, kb, fan_in, fan_out):
        bound = 1.0 / jnp.sqrt(fan_in)
        # Stored transposed vs PyTorch: (fan_in, fan_out) so kernel does x @ W.
        w = jax.random.uniform(kw, (fan_in, fan_out), jnp.float32,
                               minval=-bound, maxval=bound)
        b = jax.random.uniform(kb, (1, fan_out), jnp.float32,
                               minval=-bound, maxval=bound)
        return w, b

    w1, b1 = linear(ks[0], ks[1], input_dim, H1)
    w2, b2 = linear(ks[2], ks[3], H1, H2)
    w3, b3 = linear(ks[4], ks[5], H2, output_dim)
    return {"w1": w1, "b1": b1, "w2": w2, "b2": b2, "w3": w3, "b3": b3}


def _reference(x, p):
    h1 = jnp.maximum(x @ p["w1"] + p["b1"], 0.0)
    h2 = jnp.maximum(h1 @ p["w2"] + p["b2"], 0.0)
    return jnp.tanh(h2 @ p["w3"] + p["b3"])


if __name__ == "__main__":
    key = jax.random.PRNGKey(0)
    k_x, k_x2, k_x3, k_p = jax.random.split(key, 4)

    batch, input_dim, output_dim = 8, 32, 8
    x = jax.random.normal(k_x, (batch, input_dim), jnp.float32)
    params = init_params(k_p, input_dim, output_dim)
    ref = _reference(x, params)

    # f32 MXU path: tight tolerance vs reference.
    out = jax.block_until_ready(bc_network_panda(x, params))
    assert out.shape == (batch, output_dim)
    assert jnp.allclose(out, ref, atol=1e-5, rtol=1e-5), \
        float(jnp.max(jnp.abs(out - ref)))

    # bf16-operand MXU path (+ bf16 output): loosened tolerance.
    out_bf16 = jax.block_until_ready(
        bc_network_panda(x, params, use_bf16_mxu=True,
                         out_dtype=jnp.bfloat16))
    assert out_bf16.shape == (batch, output_dim)
    assert jnp.allclose(out_bf16.astype(jnp.float32), ref,
                        atol=5e-2, rtol=5e-2), \
        float(jnp.max(jnp.abs(out_bf16.astype(jnp.float32) - ref)))

    # Odd batch size exercises the ragged (masked) last batch tile.
    x2 = jax.random.normal(k_x2, (13, input_dim), jnp.float32)
    out2 = jax.block_until_ready(bc_network_panda(x2, params))
    assert out2.shape == (13, output_dim)
    assert jnp.allclose(out2, _reference(x2, params), atol=1e-5, rtol=1e-5)

    # Larger batch exercises a multi-step (>=2) grid for the megacore split.
    x3 = jax.random.normal(k_x3, (1040, input_dim), jnp.float32)
    out3 = jax.block_until_ready(bc_network_panda(x3, params))
    assert out3.shape == (1040, output_dim)
    assert jnp.allclose(out3, _reference(x3, params), atol=1e-5, rtol=1e-5)

    print("KERNEL_OK")
</pallas_src>

<mosaic_0001>
module attributes {stable_mosaic.version = 11 : i64} {
  func.func @_bc_mlp_kernel(%arg0: i32, %arg1: memref<8x32xf32, #tpu.memory_space<vmem>>, %arg2: memref<32x256xf32, #tpu.memory_space<vmem>>, %arg3: memref<1x256xf32, #tpu.memory_space<vmem>>, %arg4: memref<256x128xf32, #tpu.memory_space<vmem>>, %arg5: memref<1x128xf32, #tpu.memory_space<vmem>>, %arg6: memref<128x128xf32, #tpu.memory_space<vmem>>, %arg7: memref<1x128xf32, #tpu.memory_space<vmem>>, %arg8: memref<8x128xf32, #tpu.memory_space<vmem>>) attributes {dimension_semantics = [#tpu.dimension_semantics<parallel>], iteration_bounds = array<i64: 1>, scalar_prefetch = 0 : i64, scratch_operands = 0 : i64, tpu.core_type = #tpu.core_type<tc>, window_params = [{transform_indices = @transform_0, window_bounds = array<i64: 8, 32>}, {pipeline_mode = #tpu.pipeline_mode<synchronous>, transform_indices = @transform_1, window_bounds = array<i64: 32, 256>}, {pipeline_mode = #tpu.pipeline_mode<synchronous>, transform_indices = @transform_2, window_bounds = array<i64: 1, 256>}, {pipeline_mode = #tpu.pipeline_mode<synchronous>, transform_indices = @transform_3, window_bounds = array<i64: 256, 128>}, {pipeline_mode = #tpu.pipeline_mode<synchronous>, transform_indices = @transform_4, window_bounds = array<i64: 1, 128>}, {pipeline_mode = #tpu.pipeline_mode<synchronous>, transform_indices = @transform_5, window_bounds = array<i64: 128, 128>}, {pipeline_mode = #tpu.pipeline_mode<synchronous>, transform_indices = @transform_6, window_bounds = array<i64: 1, 128>}, {transform_indices = @transform_7, window_bounds = array<i64: 8, 128>}]} {
    %c0 = arith.constant 0 : index
    %c0_0 = arith.constant 0 : index
    %0 = vector.load %arg1[%c0, %c0_0] : memref<8x32xf32, #tpu.memory_space<vmem>>, vector<8x32xf32>
    %c0_1 = arith.constant 0 : index
    %c0_2 = arith.constant 0 : index
    %1 = vector.load %arg2[%c0_1, %c0_2] : memref<32x256xf32, #tpu.memory_space<vmem>>, vector<32x256xf32>
    %cst = arith.constant dense<0.000000e+00> : vector<8x256xf32>
    %2 = tpu.matmul %0, %1, %cst {dimension_numbers = #tpu.dot_dimension_numbers<[1], [0], [0], [1], [0, 0, 1, 1], [], []>} : vector<8x32xf32>, vector<32x256xf32>, vector<8x256xf32> -> vector<8x256xf32>
    %c0_3 = arith.constant 0 : index
    %c0_4 = arith.constant 0 : index
    %3 = vector.load %arg3[%c0_3, %c0_4] : memref<1x256xf32, #tpu.memory_space<vmem>>, vector<1x256xf32>
    %4 = vector.broadcast %3 : vector<1x256xf32> to vector<8x256xf32>
    %5 = arith.addf %2, %4 : vector<8x256xf32>
    %cst_5 = arith.constant 0.000000e+00 : f32
    %6 = vector.broadcast %cst_5 : f32 to vector<8x256xf32>
    %7 = arith.maximumf %5, %6 : vector<8x256xf32>
    %c0_6 = arith.constant 0 : index
    %c0_7 = arith.constant 0 : index
    %8 = vector.load %arg4[%c0_6, %c0_7] : memref<256x128xf32, #tpu.memory_space<vmem>>, vector<256x128xf32>
    %cst_8 = arith.constant dense<0.000000e+00> : vector<8x128xf32>
    %9 = tpu.matmul %7, %8, %cst_8 {dimension_numbers = #tpu.dot_dimension_numbers<[1], [0], [0], [1], [0, 0, 1, 1], [], []>} : vector<8x256xf32>, vector<256x128xf32>, vector<8x128xf32> -> vector<8x128xf32>
    %c0_9 = arith.constant 0 : index
    %c0_10 = arith.constant 0 : index
    %10 = vector.load %arg5[%c0_9, %c0_10] : memref<1x128xf32, #tpu.memory_space<vmem>>, vector<1x128xf32>
    %11 = vector.broadcast %10 : vector<1x128xf32> to vector<8x128xf32>
    %12 = arith.addf %9, %11 : vector<8x128xf32>
    %cst_11 = arith.constant 0.000000e+00 : f32
    %13 = vector.broadcast %cst_11 : f32 to vector<8x128xf32>
    %14 = arith.maximumf %12, %13 : vector<8x128xf32>
    %c0_12 = arith.constant 0 : index
    %c0_13 = arith.constant 0 : index
    %15 = vector.load %arg6[%c0_12, %c0_13] : memref<128x128xf32, #tpu.memory_space<vmem>>, vector<128x128xf32>
    %cst_14 = arith.constant dense<0.000000e+00> : vector<8x128xf32>
    %16 = tpu.matmul %14, %15, %cst_14 {dimension_numbers = #tpu.dot_dimension_numbers<[1], [0], [0], [1], [0, 0, 1, 1], [], []>} : vector<8x128xf32>, vector<128x128xf32>, vector<8x128xf32> -> vector<8x128xf32>
    %c0_15 = arith.constant 0 : index
    %c0_16 = arith.constant 0 : index
    %17 = vector.load %arg7[%c0_15, %c0_16] : memref<1x128xf32, #tpu.memory_space<vmem>>, vector<1x128xf32>
    %18 = vector.broadcast %17 : vector<1x128xf32> to vector<8x128xf32>
    %19 = arith.addf %16, %18 : vector<8x128xf32>
    %20 = math.tanh %19 : vector<8x128xf32>
    %c0_17 = arith.constant 0 : index
    %c0_18 = arith.constant 0 : index
    %21 = vector.load %arg8[%c0_17, %c0_18] : memref<8x128xf32, #tpu.memory_space<vmem>>, vector<8x128xf32>
    tpu.vector_store %arg8[%c0_17, %c0_18], %20 {strides = array<i32>} : memref<8x128xf32, #tpu.memory_space<vmem>>, vector<8x128xf32>,
    return
  }
  func.func @transform_0(%arg0: i32) -> (i32, i32) {
    %c0_i32 = arith.constant 0 : i32
    %c0_i32_0 = arith.constant 0 : i32
    return %arg0, %c0_i32 : i32, i32
  }
  func.func @transform_1(%arg0: i32) -> (i32, i32) {
    %c0_i32 = arith.constant 0 : i32
    %c0_i32_0 = arith.constant 0 : i32
    %c0_i32_1 = arith.constant 0 : i32
    return %c0_i32, %c0_i32_0 : i32, i32
  }
  func.func @transform_2(%arg0: i32) -> (i32, i32) {
    %c0_i32 = arith.constant 0 : i32
    %c0_i32_0 = arith.constant 0 : i32
    %c0_i32_1 = arith.constant 0 : i32
    return %c0_i32, %c0_i32_0 : i32, i32
  }
  func.func @transform_3(%arg0: i32) -> (i32, i32) {
    %c0_i32 = arith.constant 0 : i32
    %c0_i32_0 = arith.constant 0 : i32
    %c0_i32_1 = arith.constant 0 : i32
    return %c0_i32, %c0_i32_0 : i32, i32
  }
  func.func @transform_4(%arg0: i32) -> (i32, i32) {
    %c0_i32 = arith.constant 0 : i32
    %c0_i32_0 = arith.constant 0 : i32
    %c0_i32_1 = arith.constant 0 : i32
    return %c0_i32, %c0_i32_0 : i32, i32
  }
  func.func @transform_5(%arg0: i32) -> (i32, i32) {
    %c0_i32 = arith.constant 0 : i32
    %c0_i32_0 = arith.constant 0 : i32
    %c0_i32_1 = arith.constant 0 : i32
    return %c0_i32, %c0_i32_0 : i32, i32
  }
  func.func @transform_6(%arg0: i32) -> (i32, i32) {
    %c0_i32 = arith.constant 0 : i32
    %c0_i32_0 = arith.constant 0 : i32
    %c0_i32_1 = arith.constant 0 : i32
    return %c0_i32, %c0_i32_0 : i32, i32
  }
  func.func @transform_7(%arg0: i32) -> (i32, i32) {
    %c0_i32 = arith.constant 0 : i32
    %c0_i32_0 = arith.constant 0 : i32
    return %arg0, %c0_i32 : i32, i32
  }
}

</mosaic_0001>

<bundles_post_ra>
// kernel: tpu_custom_call.1
= control target key start
LH: loop header
LB: loop body
LE: loop exit
PB: predicated region body
PF: predicated region fallthrough
CT: control target
= control target key end

     0   :  { %12 = vsyncpa [#allocation3], 0  ;;  %s809_s0 = inlined_call_operand.hbm [shape: f32[8,32], index: 0, kind: input, shape index: {}]   ;;  %s810_s1 = inlined_call_operand.hbm [shape: f32[32,256], index: 1, kind: input, shape index: {}]   ;;  %s811_s2 = inlined_call_operand.vmem [shape: f32[1,256], index: 2, kind: input, shape index: {}]   ;;  %s812_s3 = inlined_call_operand.hbm [shape: f32[256,128], index: 3, kind: input, shape index: {}]   ;;  %s813_s4 = inlined_call_operand.vmem [shape: f32[1,128], index: 4, kind: input, shape index: {}]   ;;  %s814_s5 = inlined_call_operand.hbm [shape: f32[128,128], index: 5, kind: input, shape index: {}]   ;;  %s815_s6 = inlined_call_operand.vmem [shape: f32[1,128], index: 6, kind: input, shape index: {}]   ;;  %s816_s7 = inlined_call_operand.hbm [shape: f32[8,128], index: 7, kind: output, shape index: {}]  }
   0x1   :  { %13 = vsyncpa [#allocation6], 0 }
   0x2   :  { %14 = vsyncpa [#allocation9], 0 }
   0x3   :  { %15 = vsyncpa [#allocation4], 0  ;;  %s686_s24 = smov [#allocation5]   ;;  %s568_s28 = scalar_lea.hbm %s810_s1, 1024 }
   0x4   :  { %s31_s25 = sshll.u32 %s686_s24, 4  ;;  %p569_p0 = scmp.ne.s32.totalorder %s810_s1, %s568_s28  ;;  %s32_s25 = int_to_ptr.vmem [resolvable:$true] %s31_s25 }
   0x5   :  { %p572_p1 = scmp.lt.u32.totalorder %s568_s28, %s810_s1 }
   0x7   :  { %p574_p2 = pnand %p572_p1, %p569_p0 }
   0x9   :  { %577 = shalt.err (!%p574_p2)
}
   0xa   :  { %s578_s10 = scalar_lea.vmem %s32_s25, 1024  ;;  %p583_p4 = scmp.lt.s32.totalorder %s32_s25, %s32_s25 }
   0xb   :  { %p579_p3 = scmp.ne.s32.totalorder %s32_s25, %s578_s10  ;;  %p584_p5 = scmp.lt.s32.totalorder %s578_s10, %s578_s10 }
   0xd   :  { %p585_p6 = por %p584_p5, %p583_p4 }
   0xf   :  { %p586_p7 = pnand %p585_p6, %p579_p3 }
  0x11   :  { %589 = shalt.err (!%p586_p7)
}
  0x12   :  { %s687_s11 = smov 256   ;;  %s688_s12 = smov 16  }
  0x13   :  { %37 = dma.hbm_to_vmem [thread:$0]  %s810_s1, 1024, %s32_s25, [#allocation6], %s687_s11, %s687_s11, %s688_s12  }
  0x14   :  { %s689_s15 = smov [#allocation2]   ;;  %s690_s17 = smov [#allocation7]  }
  0x15   :  { %s22_s16 = sshll.u32 %s689_s15, 4  ;;  %s45_s18 = sshll.u32 %s690_s17, 4  ;;  %s23_s16 = int_to_ptr.vmem [resolvable:$true] %s22_s16  ;;  %s46_s18 = int_to_ptr.vmem [resolvable:$true] %s45_s18 }
  0x16   :  { %s590_s21 = scalar_lea.hbm %s809_s0, 128 }
  0x17   :  { %p591_p8 = scmp.ne.s32.totalorder %s809_s0, %s590_s21  ;;  %p594_p9 = scmp.lt.u32.totalorder %s590_s21, %s809_s0 }
  0x19   :  { %p596_p10 = pnand %p594_p9, %p591_p8 }
  0x1b   :  { %599 = shalt.err (!%p596_p10)
}
  0x1c   :  { %s600_s1 = scalar_lea.vmem %s23_s16, 128  ;;  %p605_p12 = scmp.lt.s32.totalorder %s23_s16, %s23_s16 }
  0x1d   :  { %p601_p11 = scmp.ne.s32.totalorder %s23_s16, %s600_s1  ;;  %p606_p13 = scmp.lt.s32.totalorder %s600_s1, %s600_s1 }
  0x1f   :  { %p607_p0 = por %p606_p13, %p605_p12 }
  0x21   :  { %p608_p1 = pnand %p607_p0, %p601_p11 }
  0x23   :  { %611 = shalt.err (!%p608_p1)
}
  0x24   :  { %25 = dma.hbm_to_vmem [thread:$0]  %s809_s0, 128, %s23_s16, [#allocation3]  }
  0x25   :  { %s612_s30 = scalar_lea.hbm %s812_s3, 4096 }
  0x26   :  { %p613_p2 = scmp.ne.s32.totalorder %s812_s3, %s612_s30  ;;  %p616_p3 = scmp.lt.u32.totalorder %s612_s30, %s812_s3 }
  0x28   :  { %p618_p4 = pnand %p616_p3, %p613_p2 }
  0x2a   :  { %621 = shalt.err (!%p618_p4)
}
  0x2b   :  { %s622_s12 = scalar_lea.vmem %s46_s18, 4096  ;;  %p627_p6 = scmp.lt.s32.totalorder %s46_s18, %s46_s18 }
  0x2c   :  { %p623_p5 = scmp.ne.s32.totalorder %s46_s18, %s622_s12  ;;  %p628_p7 = scmp.lt.s32.totalorder %s622_s12, %s622_s12 }
  0x2e   :  { %p629_p8 = por %p628_p7, %p627_p6 }
  0x30   :  { %p630_p9 = pnand %p629_p8, %p623_p5 }
  0x32   :  { %633 = shalt.err (!%p630_p9)
}
  0x33   :  { %s691_s0 = smov 128   ;;  %s692_s13 = smov 8  }
  0x34   :  { %51 = dma.hbm_to_vmem [thread:$0]  %s812_s3, 4096, %s46_s18, [#allocation6], %s691_s0, %s691_s0, %s692_s13  }
  0x35   :  { %s693_s16 = smov [#allocation8]   ;;  %s634_s21 = scalar_lea.hbm %s814_s5, 2048 }
  0x36   :  { %s59_s17 = sshll.u32 %s693_s16, 4  ;;  %p635_p10 = scmp.ne.s32.totalorder %s814_s5, %s634_s21  ;;  %s60_s17 = int_to_ptr.vmem [resolvable:$true] %s59_s17 }
  0x37   :  { %p638_p11 = scmp.lt.u32.totalorder %s634_s21, %s814_s5 }
  0x39   :  { %p640_p12 = pnand %p638_p11, %p635_p10 }
  0x3b   :  { %643 = shalt.err (!%p640_p12)
}
  0x3c   :  { %s644_s1 = scalar_lea.vmem %s60_s17, 2048  ;;  %p649_p0 = scmp.lt.s32.totalorder %s60_s17, %s60_s17 }
  0x3d   :  { %p645_p13 = scmp.ne.s32.totalorder %s60_s17, %s644_s1  ;;  %p650_p1 = scmp.lt.s32.totalorder %s644_s1, %s644_s1 }
  0x3f   :  { %p651_p2 = por %p650_p1, %p649_p0 }
  0x41   :  { %p652_p3 = pnand %p651_p2, %p645_p13 }
  0x43   :  { %655 = shalt.err (!%p652_p3)
}
  0x44   :  { %65 = dma.hbm_to_vmem [thread:$0]  %s814_s5, 2048, %s60_s17, [#allocation9], %s691_s0, %s691_s0, %s692_s13  }
  0x45   :  { %678 = dma.done.wait [#allocation3], 128  }
  0x46   :  { %679 = vsyncadd [#allocation3], 4294967168 }
  0x47   :  { %680 = dma.done.wait [#allocation6], 5120  }
  0x48   :  { %681 = vsyncadd [#allocation6], 4294962176 }
  0x49   :  { %682 = dma.done.wait [#allocation9], 2048  }
  0x4a   :  { %683 = vsyncadd [#allocation9], 4294965248  ;;  %v694_v0 = vmov 0.0   ;;  %v82_v1 = vld [vmem:[#allocation5 + $0x8] sm:$0xff]  ;;  %v84_v2 = vld [vmem:[#allocation5 + $0x18] sm:$0xff]  ;;  %vm101_vm0 = vcmask 261120  }
  0x4b   :  { %169 = vmatprep.mubr.f32.mxu0 %v694_v0  ;;  %v81_v3 = vld [vmem:[#allocation5] sm:$0xff]  ;;  %v490_v4 = vpack.c.bf16 %v84_v2, %v82_v1  ;;  %v83_v5 = vld [vmem:[#allocation5 + $0x10] sm:$0xff]  ;;  %v86_v6 = vld [vmem:[#allocation5 + $0x28] sm:$0xff]  ;;  %v695_v2 = vmov 0.0|0.0   ;;  %vm696_vm1 = vmmov 0   ;;  %s697_s30 = smov [#allocation10]  }
  0x4c   :  { %v88_v7 = vld [vmem:[#allocation5 + $0x38] sm:$0xff]  ;;  %v492_v8 = vpack.c.bf16 %v83_v5, %v81_v3  ;;  %v85_v10 = vld [vmem:[#allocation5 + $0x20] sm:$0xff]  ;;  %v87_v11 = vld [vmem:[#allocation5 + $0x30] sm:$0xff]  ;;  %s389_s8 = sshll.u32 %s697_s30, 4  ;;  %s390_s8 = int_to_ptr.vmem [resolvable:$true] %s389_s8 }
  0x4d   :  { %v494_v9 = vpack.c.bf16 %v88_v7, %v86_v6  ;;  %491 = vmatprep.subr.bf16.mxu0 %v490_v4  ;;  %v194_v12 = vld [vmem:[#allocation7 + $0x80] sm:$0xff]  ;;  %v195_v13 = vld [vmem:[#allocation7 + $0x88] sm:$0xff]  ;;  %v496_v15 = vpack.c.bf16 %v87_v11, %v85_v10  ;;  %v196_v18 = vld [vmem:[#allocation7 + $0x90] sm:$0xff]  ;;  %s656_s9 = scalar_lea.vmem %s390_s8, 128  ;;  %p661_p5 = scmp.lt.s32.totalorder %s390_s8, %s390_s8 }
  0x4e   :  { %v178_v14 = vld [vmem:[#allocation7] sm:$0xff]  ;;  %493 = vmatpush1.bf16.msra.mxu0 %v492_v8  ;;  %v498_v16 = vpack.c.bf16 %v195_v13, %v194_v12  ;;  %v179_v17 = vld [vmem:[#allocation7 + $0x8] sm:$0xff]  ;;  %v197_v19 = vld [vmem:[#allocation7 + $0x98] sm:$0xff]  ;;  %p657_p4 = scmp.ne.s32.totalorder %s390_s8, %s656_s9  ;;  %p662_p6 = scmp.lt.s32.totalorder %s656_s9, %s656_s9 }
  0x4f   :  { %495 = vmatprep.subr.bf16.mxu0 %v494_v9  ;;  %v500_v20 = vpack.c.bf16 %v179_v17, %v178_v14  ;;  %v502_v21 = vpack.c.bf16 %v197_v19, %v196_v18  ;;  %v180_v22 = vld [vmem:[#allocation7 + $0x10] sm:$0xff]  ;;  %v181_v23 = vld [vmem:[#allocation7 + $0x18] sm:$0xff]  ;;  %v198_v24 = vld [vmem:[#allocation7 + $0xa0] sm:$0xff]  ;;  %v91_v18 = vlaneseq }
  0x50   :  { %499 = vmatprep.subr.bf16.mxu1 %v498_v16  ;;  %v199_v25 = vld [vmem:[#allocation7 + $0xa8] sm:$0xff]  ;;  %v504_v26 = vpack.c.bf16 %v181_v23, %v180_v22  ;;  %v80_v27 = vld [vmem:[#allocation2] sm:$0xff]  ;;  %v182_v29 = vld [vmem:[#allocation7 + $0x20] sm:$0xff]  ;;  %p663_p7 = por %p662_p6, %p661_p5 }
  0x51   :  { %501 = vmatpush3.bf16.msra.mxu1 %v500_v20  ;;  %v506_v28 = vpack.c.bf16 %v199_v25, %v198_v24  ;;  %v183_v30 = vld [vmem:[#allocation7 + $0x28] sm:$0xff]  ;;  %v200_v31 = vld [vmem:[#allocation7 + $0xb0] sm:$0xff]  ;;  %v201_v32 = vld [vmem:[#allocation7 + $0xb8] sm:$0xff]  ;;  %v92_v19 = vshrl.u32 %v91_v18, 7 }
  0x52   :  { %497 = vmatpush1.bf16.msra.mxu0 %v496_v15  ;;  %503 = vmatprep.subr.bf16.mxu1 %v502_v21  ;;  %v508_v33 = vpack.c.bf16 %v183_v30, %v182_v29  ;;  %v510_v34 = vpack.c.bf16 %v201_v32, %v200_v31  ;;  %v184_v35 = vld [vmem:[#allocation7 + $0x30] sm:$0xff]  ;;  %v185_v36 = vld [vmem:[#allocation7 + $0x38] sm:$0xff]  ;;  %v202_v37 = vld [vmem:[#allocation7 + $0xc0] sm:$0xff]  ;;  %p664_p8 = pnand %p663_p7, %p657_p4 }
  0x53   :  { %v203_v38 = vld [vmem:[#allocation7 + $0xc8] sm:$0xff]  ;;  %v512_v39 = vpack.c.bf16 %v185_v36, %v184_v35  ;;  %v186_v41 = vld [vmem:[#allocation7 + $0x40] sm:$0xff]  ;;  %v204_v43 = vld [vmem:[#allocation7 + $0xd0] sm:$0xff]  ;;  %530 = vmatprep.subr.bf16.mxu0 %v695_v2  ;;  %v93_v20 = vsub.s32 0, %v92_v19  ;;  %v97_v22 = vsub.s32 1, %v92_v19 }
  0x54   :  { %v514_v40 = vpack.c.bf16 %v203_v38, %v202_v37  ;;  %v187_v42 = vld [vmem:[#allocation7 + $0x48] sm:$0xff]  ;;  %v205_v44 = vld [vmem:[#allocation7 + $0xd8] sm:$0xff]  ;;  %v188_v47 = vld [vmem:[#allocation7 + $0x50] sm:$0xff] }
  0x55   :  { %400 = vmatmul.mubr.msk.f32.vlgmr.msra.gmra.mrb[0].mxu0 %vm101_vm0, %v80_v27  ;;  %505 = vmatpush3.bf16.msra.mxu1 %v504_v26  ;;  %v516_v45 = vpack.c.bf16 %v187_v42, %v186_v41  ;;  %v518_v46 = vpack.c.bf16 %v205_v44, %v204_v43  ;;  %v189_v48 = vld [vmem:[#allocation7 + $0x58] sm:$0xff]  ;;  %v206_v49 = vld [vmem:[#allocation7 + $0xe0] sm:$0xff]  ;;  %v207_v50 = vld [vmem:[#allocation7 + $0xe8] sm:$0xff] }
  0x56   :  { %507 = vmatprep.subr.bf16.mxu1 %v506_v28  ;;  %v520_v51 = vpack.c.bf16 %v189_v48, %v188_v47  ;;  %v522_v52 = vpack.c.bf16 %v207_v50, %v206_v49  ;;  %v190_v53 = vld [vmem:[#allocation7 + $0x60] sm:$0xff]  ;;  %v191_v54 = vld [vmem:[#allocation7 + $0x68] sm:$0xff]  ;;  %v208_v56 = vld [vmem:[#allocation7 + $0xf0] sm:$0xff]  ;;  %487 = vmatprep.mubr.msk.f32.mxu0 %vm696_vm1, %v694_v0 }
  0x57   :  { %v524_v55 = vpack.c.bf16 %v191_v54, %v190_v53  ;;  %v209_v57 = vld [vmem:[#allocation7 + $0xf8] sm:$0xff]  ;;  %v192_v59 = vld [vmem:[#allocation7 + $0x70] sm:$0xff]  ;;  %v288_v62 = vld [vmem:[#allocation8] sm:$0xff] }
  0x58   :  { %v526_v58 = vpack.c.bf16 %v209_v57, %v208_v56  ;;  %v193_v60 = vld [vmem:[#allocation7 + $0x78] sm:$0xff]  ;;  %v289_v63 = vld [vmem:[#allocation8 + $0x8] sm:$0xff]  ;;  %v290_v1 = vld [vmem:[#allocation8 + $0x10] sm:$0xff] }
  0x59   :  { %509 = vmatpush3.bf16.msra.mxu1 %v508_v33  ;;  %v528_v61 = vpack.c.bf16 %v193_v60, %v192_v59  ;;  %v531_v3 = vpack.c.bf16 %v289_v63, %v288_v62  ;;  %v291_v4 = vld [vmem:[#allocation8 + $0x18] sm:$0xff]  ;;  %v292_v6 = vld [vmem:[#allocation8 + $0x20] sm:$0xff]  ;;  %v293_v7 = vld [vmem:[#allocation8 + $0x28] sm:$0xff] }
  0x5a   :  { %511 = vmatprep.subr.bf16.mxu1 %v510_v34  ;;  %v534_v5 = vpack.c.bf16 %v291_v4, %v290_v1  ;;  %v537_v8 = vpack.c.bf16 %v293_v7, %v292_v6  ;;  %v294_v9 = vld [vmem:[#allocation8 + $0x30] sm:$0xff]  ;;  %v295_v10 = vld [vmem:[#allocation8 + $0x38] sm:$0xff]  ;;  %v296_v12 = vld [vmem:[#allocation8 + $0x40] sm:$0xff] }
  0x5b   :  { %532 = vmatpush3.bf16.msra.mxu0 %v531_v3  ;;  %v540_v11 = vpack.c.bf16 %v295_v10, %v294_v9  ;;  %v297_v13 = vld [vmem:[#allocation8 + $0x48] sm:$0xff]  ;;  %v298_v15 = vld [vmem:[#allocation8 + $0x50] sm:$0xff]  ;;  %v299_v16 = vld [vmem:[#allocation8 + $0x58] sm:$0xff] }
  0x5c   :  { %533 = vmatprep.subr.bf16.mxu0 %v695_v2  ;;  %v543_v14 = vpack.c.bf16 %v297_v13, %v296_v12  ;;  %v546_v17 = vpack.c.bf16 %v299_v16, %v298_v15  ;;  %v89_v21 = vld [vmem:[%s811_s2] sm:$0x3]  ;;  %v300_v31 = vld [vmem:[#allocation8 + $0x60] sm:$0xff]  ;;  %v301_v32 = vld [vmem:[#allocation8 + $0x68] sm:$0xff] }
  0x5d   :  { %513 = vmatpush3.bf16.msra.mxu1 %v512_v39  ;;  %v94_v23 = vrot.slane %v89_v21, %v93_v20  ;;  %v98_v24 = vrot.slane %v89_v21, %v97_v22  ;;  %v549_v33 = vpack.c.bf16 %v301_v32, %v300_v31  ;;  %v302_v34 = vld [vmem:[#allocation8 + $0x70] sm:$0xff]  ;;  %v303_v35 = vld [vmem:[#allocation8 + $0x78] sm:$0xff] }
  0x5e   :  { %515 = vmatprep.subr.bf16.mxu1 %v514_v40  ;;  %v552_v36 = vpack.c.bf16 %v303_v35, %v302_v34  ;;  %v401_v38 = vld [vmem:[%s813_s4] ss:$0 sm:$0xff] }
  0x5f   :  { %535 = vmatpush3.bf16.msra.mxu0 %v534_v5  ;;  %v402_v43 = vld [vmem:[%s815_s6] ss:$0 sm:$0xff] }
  0x60   :  { %536 = vmatprep.subr.bf16.mxu0 %v695_v2 }
  0x61   :  { %517 = vmatpush3.bf16.msra.mxu1 %v516_v45 }
  0x62   :  { %519 = vmatprep.subr.bf16.mxu1 %v518_v46 }
  0x63   :  { %538 = vmatpush3.bf16.msra.mxu0 %v537_v8 }
  0x64   :  { %539 = vmatprep.subr.bf16.mxu0 %v695_v2 }
  0x65   :  { %521 = vmatpush3.bf16.msra.mxu1 %v520_v51 }
  0x66   :  { %523 = vmatprep.subr.bf16.mxu1 %v522_v52 }
  0x67   :  { %541 = vmatpush3.bf16.msra.mxu0 %v540_v11 }
  0x68   :  { %542 = vmatprep.subr.bf16.mxu0 %v695_v2 }
  0x69   :  { %525 = vmatpush3.bf16.msra.mxu1 %v524_v55 }
  0x6a   :  { %527 = vmatprep.subr.bf16.mxu1 %v526_v58 }
  0x6b   :  { %544 = vmatpush3.bf16.msra.mxu0 %v543_v14 }
  0x6c   :  { %545 = vmatprep.subr.bf16.mxu0 %v695_v2 }
  0x6d   :  { %529 = vmatpush3.bf16.msra.mxu1 %v528_v61 }
  0x6f   :  { %547 = vmatpush3.bf16.msra.mxu0 %v546_v17 }
  0x70   :  { %548 = vmatprep.subr.bf16.mxu0 %v695_v2 }
  0x73   :  { %550 = vmatpush3.bf16.msra.mxu0 %v549_v33 }
  0x74   :  { %551 = vmatprep.subr.bf16.mxu0 %v695_v2 }
  0x77   :  { %553 = vmatpush3.bf16.msra.mxu0 %v552_v36 }
 0x128   :  { %v171_v25 = vpop.f32.mrb[0].mxu0 }
 0x129   :  { %v172_v26 = vadd.f32 %v171_v25, %v94_v23  ;;  %v173_v27 = vpop.f32.mrb[1].mxu0 }
 0x12a   :  { %v174_v28 = vadd.f32 %v173_v27, %v98_v24 }
 0x12b   :  { %v176_v30 = vmax.f32 %v172_v26, 0.0 }
 0x12c   :  { %v177_v29 = vmax.f32 %v174_v28, 0.0 }
 0x12e   :  { %281 = vmatprep.mubr.f32.mxu1 %v177_v29 }
 0x12f   :  { %282 = vmatmul.mubr.f32.vlgmr.msra.gmra.mrb[0].mxu1 %v176_v30 }
 0x202   :  { %v435_v37 = vpop.f32.mrb[0].mxu1 }
 0x203   :  { %v436_v39 = vpop.f32.mrb[1].mxu1 }
 0x204   :  { %v437_v40 = vadd.f32 %v436_v39, %v435_v37 }
 0x206   :  { %v284_v41 = vadd.f32 %v437_v40, %v401_v38 }
 0x208   :  { %v287_v42 = vmax.f32 %v284_v41, 0.0 }
 0x20a   :  { %488 = vmatmul.mubr.f32.vlgmr.msra.gmra.mrb[2].mxu0 %v287_v42 }
 0x2dd   :  { %v377_v44 = vpop.f32.mrb[2].mxu0 }
 0x2de   :  { %v378_v45 = vadd.f32 %v402_v43, %v377_v44  ;;  %v489_v46 = vpop.f32.mrb[3].mxu0 }
 0x2e0   :  { %566 = vtanh.f32 %v378_v45 }
 0x2ea   :  { %v567_v0 = vpop.eup %566 }
 0x2eb   :  { %382 = vst [vmem:[#allocation10] sm:$0xff] %v567_v0 }
 0x2ec   :  { %667 = shalt.err (!%p664_p8)
}
 0x2ed   :  { %s668_s6 = scalar_lea.hbm %s816_s7, 128 }
 0x2ee   :  { %p669_p9 = scmp.ne.s32.totalorder %s816_s7, %s668_s6  ;;  %p672_p10 = scmp.lt.u32.totalorder %s668_s6, %s816_s7 }
 0x2f0   :  { %p674_p11 = pnand %p672_p10, %p669_p9 }
 0x2f2   :  { %677 = shalt.err (!%p674_p11)
}
 0x2f3   :  { %392 = dma.vmem_to_hbm [thread:$0]  %s390_s8, 128, %s816_s7, [#allocation4]  }
 0x2f4   :  { %684 = dma.done.wait [#allocation4], 128  }
 0x2f5   :  { %685 = vsyncadd [#allocation4], 4294967168 }
 0x2f6   :  { %396 = vsyncpa [#allocation3], 1 }
 0x2f7   :  { %397 = vsyncpa [#allocation6], 1 }
 0x2f8   :  { %398 = vsyncpa [#allocation9], 1 }
 0x2f9   :  { %399 = vsyncpa [#allocation4], 1 }

</bundles_post_ra>
